<compile_context>
chip_gen: v5e
topology: v5e:2x2
jax: 0.10.0
libtpu: 0.0.40
codegen_flags: <defaults>
</compile_context>

<pallas_src>
import math

import jax
import jax.numpy as jnp
from jax.experimental import pallas as pl
from jax.experimental.pallas import tpu as pltpu


# ---------------------------------------------------------------------------
# Kernel
# ---------------------------------------------------------------------------
def _concat_last_kernel(x_ref, s_ref, o_ref):
    # torch.cat((x, store), dim=-1) on one row-tile.
    # Static slices of the output ref -> direct stores, no temporaries.
    w = x_ref.shape[-1]
    o_ref[..., :w] = x_ref[...]
    o_ref[..., w:] = s_ref[...]   # full-lane unmasked when w % 128 == 0


# ---------------------------------------------------------------------------
# Tiling helper
# ---------------------------------------------------------------------------
def _round_up(a, b):
    return (a + b - 1) // b * b


def _choose_row_tile(n_rows, w, itemsize):
    """Biggest row-tile whose (x + store + out) working set stays ~4 MiB.

    With Pallas' double buffering that is ~8 MiB of scoped VMEM -> comfortably
    inside v5e's 16 MiB default and v6e/v7x's 32 MiB default scoped VMEM
    (v7x physical VMEM is only 64 MiB, so we stay conservative).
    """
    lane_padded = max(_round_up(2 * w, 128), 128)   # account for lane padding
    bytes_per_row = 3 * lane_padded * itemsize      # x + store + out (padded)
    budget = 4 * 1024 * 1024
    tn = budget // bytes_per_row
    if tn >= n_rows:
        return n_rows                               # single full-extent block
    tn = max(8, (tn // 8) * 8)                      # keep sublane-aligned
    return min(tn, n_rows)


# ---------------------------------------------------------------------------
# Wrapper around pallas_call
# ---------------------------------------------------------------------------
def pallas_concat_last(x, store):
    assert x.shape == store.shape, "SkipConnection concat expects matching shapes"
    assert x.dtype == store.dtype

    lead = x.shape[:-1]
    w = x.shape[-1]
    n = math.prod(lead) if lead else 1

    # Collapse leading dims (free metadata reshape on contiguous arrays) so the
    # kernel sees a simple 2-D (rows, W) -> (rows, 2W) problem it can tile.
    x2 = x.reshape(n, w)
    s2 = store.reshape(n, w)

    tn = _choose_row_tile(n, w, jnp.dtype(x.dtype).itemsize)
    grid = (pl.cdiv(n, tn),)

    out2 = pl.pallas_call(
        _concat_last_kernel,
        out_shape=jax.ShapeDtypeStruct((n, 2 * w), x.dtype),
        grid=grid,
        in_specs=[
            pl.BlockSpec((tn, w), lambda i: (i, 0)),
            pl.BlockSpec((tn, w), lambda i: (i, 0)),
        ],
        out_specs=pl.BlockSpec((tn, 2 * w), lambda i: (i, 0)),
        compiler_params=pltpu.CompilerParams(
            dimension_semantics=("parallel",),   # shard rows across TCs (v7x)
        ),
    )(x2, s2)

    return out2.reshape(*lead, 2 * w)


# ---------------------------------------------------------------------------
# Module-equivalent stateful wrapper (state lives in Python, like nn.Module)
# ---------------------------------------------------------------------------
class SkipConnection:
    """First call: pass through and remember x. Second call: cat((x, store), -1)."""

    def __init__(self):
        self.store = None  # no learnable parameters in the PyTorch module

    def __call__(self, x):
        if self.store is None:
            # JAX arrays are immutable: a reference is equivalent to .clone()
            # and avoids a full HBM round trip + kernel launch.
            self.store = x
            return x
        result = pallas_concat_last(x, self.store)
        self.store = None
        return result


# ---------------------------------------------------------------------------
# Demo / self-check
# ---------------------------------------------------------------------------
if __name__ == "__main__":
    key = jax.random.PRNGKey(0)
    k1, k2 = jax.random.split(key)

    B, C, H, W = 2, 4, 16, 16  # NCHW, matching the PyTorch convention
    x1 = jax.random.normal(k1, (B, C, H, W), dtype=jnp.float32)
    x2 = jax.random.normal(k2, (B, C, H, W), dtype=jnp.float32)

    skip = SkipConnection()

    # First call: pass-through, remembers x1.
    y1 = jax.block_until_ready(skip(x1))
    assert y1.shape == (B, C, H, W)
    assert jnp.allclose(y1, x1)

    # Second call: concat((x2, stored x1), dim=-1) and reset the store.
    y2 = jax.block_until_ready(skip(x2))
    assert y2.shape == (B, C, H, 2 * W)
    expected = jnp.concatenate([x2, x1], axis=-1)
    assert jnp.allclose(y2, expected)
    assert skip.store is None

    # Third call behaves like a fresh first call again.
    y3 = jax.block_until_ready(skip(x2))
    assert jnp.allclose(y3, x2)

    print("KERNEL_OK")
</pallas_src>

<mosaic_0001>
module attributes {stable_mosaic.version = 11 : i64} {
  func.func @_concat_last_kernel(%arg0: i32, %arg1: memref<128x16xf32, #tpu.memory_space<vmem>>, %arg2: memref<128x16xf32, #tpu.memory_space<vmem>>, %arg3: memref<128x32xf32, #tpu.memory_space<vmem>>) attributes {dimension_semantics = [#tpu.dimension_semantics<parallel>], iteration_bounds = array<i64: 1>, scalar_prefetch = 0 : i64, scratch_operands = 0 : i64, tpu.core_type = #tpu.core_type<tc>, window_params = [{transform_indices = @transform_0, window_bounds = array<i64: 128, 16>}, {transform_indices = @transform_1, window_bounds = array<i64: 128, 16>}, {transform_indices = @transform_2, window_bounds = array<i64: 128, 32>}]} {
    %c0 = arith.constant 0 : index
    %c0_0 = arith.constant 0 : index
    %0 = vector.load %arg1[%c0, %c0_0] : memref<128x16xf32, #tpu.memory_space<vmem>>, vector<128x16xf32>
    %c0_1 = arith.constant 0 : index
    %c0_2 = arith.constant 0 : index
    %1 = vector.load %arg3[%c0_1, %c0_2] : memref<128x32xf32, #tpu.memory_space<vmem>>, vector<128x16xf32>
    tpu.vector_store %arg3[%c0_1, %c0_2], %0 {strides = array<i32>} : memref<128x32xf32, #tpu.memory_space<vmem>>, vector<128x16xf32>,
    %c0_3 = arith.constant 0 : index
    %c0_4 = arith.constant 0 : index
    %2 = vector.load %arg2[%c0_3, %c0_4] : memref<128x16xf32, #tpu.memory_space<vmem>>, vector<128x16xf32>
    %c0_5 = arith.constant 0 : index
    %c16 = arith.constant 16 : index
    %3 = vector.load %arg3[%c0_5, %c16] : memref<128x32xf32, #tpu.memory_space<vmem>>, vector<128x16xf32>
    tpu.vector_store %arg3[%c0_5, %c16], %2 {strides = array<i32>} : memref<128x32xf32, #tpu.memory_space<vmem>>, vector<128x16xf32>,
    return
  }
  func.func @transform_0(%arg0: i32) -> (i32, i32) {
    %c0_i32 = arith.constant 0 : i32
    %c0_i32_0 = arith.constant 0 : i32
    return %arg0, %c0_i32 : i32, i32
  }
  func.func @transform_1(%arg0: i32) -> (i32, i32) {
    %c0_i32 = arith.constant 0 : i32
    %c0_i32_0 = arith.constant 0 : i32
    return %arg0, %c0_i32 : i32, i32
  }
  func.func @transform_2(%arg0: i32) -> (i32, i32) {
    %c0_i32 = arith.constant 0 : i32
    %c0_i32_0 = arith.constant 0 : i32
    return %arg0, %c0_i32 : i32, i32
  }
}

</mosaic_0001>

<bundles_post_ra>
// kernel: tpu_custom_call.1
= control target key start
LH: loop header
LB: loop body
LE: loop exit
PB: predicated region body
PF: predicated region fallthrough
CT: control target
= control target key end

     0   :  { %s146_s13 = smov 16   ;;  %vm27_vm0 = vcmask 130048   ;;  %vm124_vm1 = vcmask 261248   ;;  %s402_s1 = inlined_call_operand.vmem [shape: f32[128,16], index: 1, kind: input, shape index: {}]   ;;  %s403_s0 = inlined_call_operand.vmem [shape: f32[128,16], index: 0, kind: input, shape index: {}]   ;;  %s404_s2 = inlined_call_operand.vmem [shape: f32[128,32], index: 2, kind: output, shape index: {}]  }
   0x1   :  { %v44_v0 = vld [vmem:[%s402_s1] sm:$0xff]  ;;  %v46_v1 = vld [vmem:[%s402_s1 + $0x10] sm:$0xff]  ;;  %v45_v3 = vld [vmem:[%s402_s1 + $0x8] sm:$0xff] }
   0x2   :  { %76 = vrot.lane.b32.xlu0 %v44_v0, %s146_s13  ;;  %80 = vrot.lane.b32.xlu1 %v46_v1, %s146_s13  ;;  %v48_v2 = vld [vmem:[%s402_s1 + $0x20] sm:$0xff]  ;;  %v47_v4 = vld [vmem:[%s402_s1 + $0x18] sm:$0xff] }
   0x3   :  { %84 = vrot.lane.b32.xlu2 %v48_v2, %s146_s13  ;;  %v49_v5 = vld [vmem:[%s402_s1 + $0x28] sm:$0xff]  ;;  %v50_v6 = vld [vmem:[%s402_s1 + $0x30] sm:$0xff]  ;;  %v51_v7 = vld [vmem:[%s402_s1 + $0x38] sm:$0xff] }
   0x4   :  { %v52_v8 = vld [vmem:[%s402_s1 + $0x40] sm:$0xff]  ;;  %v53_v9 = vld [vmem:[%s402_s1 + $0x48] sm:$0xff]  ;;  %v54_v10 = vld [vmem:[%s402_s1 + $0x50] sm:$0xff] }
   0x5   :  { %v55_v11 = vld [vmem:[%s402_s1 + $0x58] sm:$0xff]  ;;  %v56_v12 = vld [vmem:[%s402_s1 + $0x60] sm:$0xff]  ;;  %v57_v13 = vld [vmem:[%s402_s1 + $0x68] sm:$0xff] }
   0x6   :  { %v58_v14 = vld [vmem:[%s402_s1 + $0x70] sm:$0xff]  ;;  %v59_v15 = vld [vmem:[%s402_s1 + $0x78] sm:$0xff]  ;;  %v11_v16 = vld [vmem:[%s403_s0] sm:$0xff] }
   0x7   :  { %28 = vst.msk [vmem:[%s404_s2] sm:$0xff] %vm27_vm0, %v11_v16  ;;  %v15_v17 = vld [vmem:[%s403_s0 + $0x20] sm:$0xff]  ;;  %v13_v18 = vld [vmem:[%s403_s0 + $0x10] sm:$0xff]  ;;  %v12_v19 = vld [vmem:[%s403_s0 + $0x8] sm:$0xff] }
   0x8   :  { %32 = vst.msk [vmem:[%s404_s2 + $0x20] sm:$0xff] %vm27_vm0, %v15_v17  ;;  %v16_v20 = vld [vmem:[%s403_s0 + $0x28] sm:$0xff]  ;;  %v14_v21 = vld [vmem:[%s403_s0 + $0x18] sm:$0xff]  ;;  %v17_v23 = vld [vmem:[%s403_s0 + $0x30] sm:$0xff] }
   0x9   :  { %30 = vst.msk [vmem:[%s404_s2 + $0x10] sm:$0xff] %vm27_vm0, %v13_v18  ;;  %v19_v24 = vld [vmem:[%s403_s0 + $0x40] sm:$0xff]  ;;  %v18_v25 = vld [vmem:[%s403_s0 + $0x38] sm:$0xff]  ;;  %v20_v27 = vld [vmem:[%s403_s0 + $0x48] sm:$0xff] }
   0xa   :  { %78 = vrot.lane.b32.xlu0 %v45_v3, %s146_s13  ;;  %82 = vrot.lane.b32.xlu1 %v47_v4, %s146_s13  ;;  %29 = vst.msk [vmem:[%s404_s2 + $0x8] sm:$0xff] %vm27_vm0, %v12_v19  ;;  %v22_v28 = vld [vmem:[%s403_s0 + $0x58] sm:$0xff] }
   0xb   :  { %86 = vrot.lane.b32.xlu2 %v49_v5, %s146_s13  ;;  %33 = vst.msk [vmem:[%s404_s2 + $0x28] sm:$0xff] %vm27_vm0, %v16_v20  ;;  %v21_v29 = vld [vmem:[%s403_s0 + $0x50] sm:$0xff]  ;;  %v23_v31 = vld [vmem:[%s403_s0 + $0x60] sm:$0xff] }
   0xc   :  { %31 = vst.msk [vmem:[%s404_s2 + $0x18] sm:$0xff] %vm27_vm0, %v14_v21  ;;  %v25_v34 = vld [vmem:[%s403_s0 + $0x70] sm:$0xff]  ;;  %v24_v36 = vld [vmem:[%s403_s0 + $0x68] sm:$0xff]  ;;  %v26_v37 = vld [vmem:[%s403_s0 + $0x78] sm:$0xff] }
   0xd   :  { %34 = vst.msk [vmem:[%s404_s2 + $0x30] sm:$0xff] %vm27_vm0, %v17_v23 }
   0xe   :  { %36 = vst.msk [vmem:[%s404_s2 + $0x40] sm:$0xff] %vm27_vm0, %v19_v24 }
   0xf   :  { %35 = vst.msk [vmem:[%s404_s2 + $0x38] sm:$0xff] %vm27_vm0, %v18_v25 }
  0x10   :  { %37 = vst.msk [vmem:[%s404_s2 + $0x48] sm:$0xff] %vm27_vm0, %v20_v27 }
  0x11   :  { %39 = vst.msk [vmem:[%s404_s2 + $0x58] sm:$0xff] %vm27_vm0, %v22_v28 }
  0x12   :  { %88 = vrot.lane.b32.xlu0 %v50_v6, %s146_s13  ;;  %90 = vrot.lane.b32.xlu1 %v51_v7, %s146_s13  ;;  %38 = vst.msk [vmem:[%s404_s2 + $0x50] sm:$0xff] %vm27_vm0, %v21_v29 }
  0x13   :  { %92 = vrot.lane.b32.xlu2 %v52_v8, %s146_s13  ;;  %40 = vst.msk [vmem:[%s404_s2 + $0x60] sm:$0xff] %vm27_vm0, %v23_v31 }
  0x14   :  { %42 = vst.msk [vmem:[%s404_s2 + $0x70] sm:$0xff] %vm27_vm0, %v25_v34 }
  0x15   :  { %41 = vst.msk [vmem:[%s404_s2 + $0x68] sm:$0xff] %vm27_vm0, %v24_v36 }
  0x16   :  { %43 = vst.msk [vmem:[%s404_s2 + $0x78] sm:$0xff] %vm27_vm0, %v26_v37 }
  0x1a   :  { %94 = vrot.lane.b32.xlu0 %v53_v9, %s146_s13  ;;  %96 = vrot.lane.b32.xlu1 %v54_v10, %s146_s13 }
  0x1b   :  { %98 = vrot.lane.b32.xlu2 %v55_v11, %s146_s13 }
  0x22   :  { %100 = vrot.lane.b32.xlu0 %v56_v12, %s146_s13  ;;  %102 = vrot.lane.b32.xlu1 %v57_v13, %s146_s13 }
  0x23   :  { %104 = vrot.lane.b32.xlu2 %v58_v14, %s146_s13 }
  0x2a   :  { %106 = vrot.lane.b32.xlu0 %v59_v15, %s146_s13 }
  0x5d   :  { %v85_v22 = vpop.permute.xlu2 %84 }
  0x5e   :  { %129 = vst.msk [vmem:[%s404_s2 + $0x20] sm:$0xff] %vm124_vm1, %v85_v22 }
  0x65   :  { %v87_v26 = vpop.permute.xlu2 %86 }
  0x66   :  { %130 = vst.msk [vmem:[%s404_s2 + $0x28] sm:$0xff] %vm124_vm1, %v87_v26 }
  0x6d   :  { %v93_v30 = vpop.permute.xlu2 %92 }
  0x6e   :  { %133 = vst.msk [vmem:[%s404_s2 + $0x40] sm:$0xff] %vm124_vm1, %v93_v30 }
  0x74   :  { %v77_v32 = vpop.permute.xlu0 %76  ;;  %v81_v33 = vpop.permute.xlu1 %80 }
  0x75   :  { %125 = vst.msk [vmem:[%s404_s2] sm:$0xff] %vm124_vm1, %v77_v32  ;;  %v99_v35 = vpop.permute.xlu2 %98 }
  0x76   :  { %127 = vst.msk [vmem:[%s404_s2 + $0x10] sm:$0xff] %vm124_vm1, %v81_v33 }
  0x77   :  { %136 = vst.msk [vmem:[%s404_s2 + $0x58] sm:$0xff] %vm124_vm1, %v99_v35 }
  0x7c   :  { %v79_v38 = vpop.permute.xlu0 %78  ;;  %v83_v39 = vpop.permute.xlu1 %82 }
  0x7d   :  { %126 = vst.msk [vmem:[%s404_s2 + $0x8] sm:$0xff] %vm124_vm1, %v79_v38  ;;  %v105_v40 = vpop.permute.xlu2 %104 }
  0x7e   :  { %128 = vst.msk [vmem:[%s404_s2 + $0x18] sm:$0xff] %vm124_vm1, %v83_v39 }
  0x7f   :  { %139 = vst.msk [vmem:[%s404_s2 + $0x70] sm:$0xff] %vm124_vm1, %v105_v40 }
  0x84   :  { %v89_v41 = vpop.permute.xlu0 %88  ;;  %v91_v42 = vpop.permute.xlu1 %90 }
  0x85   :  { %131 = vst.msk [vmem:[%s404_s2 + $0x30] sm:$0xff] %vm124_vm1, %v89_v41 }
  0x86   :  { %132 = vst.msk [vmem:[%s404_s2 + $0x38] sm:$0xff] %vm124_vm1, %v91_v42 }
  0x8c   :  { %v95_v43 = vpop.permute.xlu0 %94  ;;  %v97_v44 = vpop.permute.xlu1 %96 }
  0x8d   :  { %134 = vst.msk [vmem:[%s404_s2 + $0x48] sm:$0xff] %vm124_vm1, %v95_v43 }
  0x8e   :  { %135 = vst.msk [vmem:[%s404_s2 + $0x50] sm:$0xff] %vm124_vm1, %v97_v44 }
  0x94   :  { %v101_v45 = vpop.permute.xlu0 %100  ;;  %v103_v46 = vpop.permute.xlu1 %102 }
  0x95   :  { %137 = vst.msk [vmem:[%s404_s2 + $0x60] sm:$0xff] %vm124_vm1, %v101_v45 }
  0x96   :  { %138 = vst.msk [vmem:[%s404_s2 + $0x68] sm:$0xff] %vm124_vm1, %v103_v46 }
  0x9c   :  { %v107_v47 = vpop.permute.xlu0 %106 }
  0x9d   :  { %140 = vst.msk [vmem:[%s404_s2 + $0x78] sm:$0xff] %vm124_vm1, %v107_v47 }

</bundles_post_ra>
